<compile_context>
chip_gen: v5e
topology: v5e:2x2
jax: 0.10.0
libtpu: 0.0.40
codegen_flags: <defaults>
</compile_context>

<pallas_src>
import functools

import jax
import jax.numpy as jnp
from jax import lax
from jax.experimental import pallas as pl
from jax.experimental.pallas import tpu as pltpu


def _stacked_kernel(x_ref, w_ref, b_ref, o_ref, wsum_ref, *, inv_k,
                    compute_dtype):
    # Grid: (O tiles [outer], B tiles [inner]).
    # x_ref: [bm, D]   w_ref: [K, D, bn]   b_ref: [1, bn]   o_ref: [bm, bn]
    # wsum_ref (VMEM scratch): [D, bn] f32
    #
    # The weight block is resident across the inner (B) axis, so fold the
    # ensemble over K only once per O tile, into VMEM scratch.
    @pl.when(pl.program_id(1) == 0)
    def _fold():
        wsum_ref[...] = w_ref[0].astype(jnp.float32)

        def _add(k, carry):
            wsum_ref[...] += w_ref[k].astype(jnp.float32)
            return carry

        lax.fori_loop(1, w_ref.shape[0], _add, 0, unroll=True)

    x_tile = x_ref[...]
    w_tile = wsum_ref[...]
    if compute_dtype is not None:          # optional bf16 MXU path
        x_tile = x_tile.astype(compute_dtype)
        w_tile = w_tile.astype(compute_dtype)
    y = jnp.dot(x_tile, w_tile, preferred_element_type=jnp.float32)
    o_ref[...] = ((y + b_ref[...]) * jnp.float32(inv_k)).astype(o_ref.dtype)


def _prereduced_kernel(x_ref, w_ref, b_ref, o_ref, *, inv_k, compute_dtype):
    # Fallback for very large K*D: weights already summed over K in the
    # wrapper.  x_ref: [bm, D]  w_ref: [D, bn]  b_ref: [1, bn]  o_ref: [bm, bn]
    x_tile = x_ref[...]
    w_tile = w_ref[...]
    if compute_dtype is not None:
        x_tile = x_tile.astype(compute_dtype)
        w_tile = w_tile.astype(compute_dtype)
    y = jnp.dot(x_tile, w_tile, preferred_element_type=jnp.float32)
    o_ref[...] = ((y + b_ref[...]) * jnp.float32(inv_k)).astype(o_ref.dtype)


def ensemble_regression(x, weights, biases, *, bm=None, bn=None,
                        compute_dtype=None,
                        vmem_budget_bytes=20 * 1024 * 1024):
    """Ensemble-averaged linear regression.

    x: [B, D], weights: [K, D, O], biases: [K, O]  ->  [B, O] (x.dtype)
    """
    B, D = x.shape
    K, Dw, O = weights.shape
    assert Dw == D and biases.shape == (K, O)
    inv_k = 1.0 / K

    # Bias ensemble-sum in the wrapper (O(K*O) floats, done once).
    b_sum = jnp.sum(biases.astype(jnp.float32), axis=0).reshape(1, O)

    # Tile sizes: B tile multiple of 8 (256 fills the v6e/v7x MXU rows),
    # O tile multiple of 128 (lane-dense, unmasked stores).
    if bm is None:
        bm = B if B <= 256 else 256
    if bn is None:
        bn = O if O <= 512 else 512

    itemsize = 4  # f32 inputs / outputs

    def stacked_bytes(bn_):
        return (2 * K * D * bn_ * itemsize      # stacked weights (double-buf)
                + 2 * bm * D * itemsize         # x tiles
                + 2 * bm * bn_ * itemsize       # out tiles
                + 2 * 8 * bn_ * itemsize        # bias row (sublane-padded)
                + D * bn_ * 4)                  # w_sum scratch (f32)

    def prereduced_bytes(bn_):
        return (2 * D * bn_ * itemsize + 2 * bm * D * itemsize
                + 2 * bm * bn_ * itemsize + 2 * 8 * bn_ * itemsize)

    # Lane-dense candidate O tiles, largest first.
    bn_candidates = [bn] + [c for c in (512, 256, 128) if c < bn]

    use_stacked = False
    for c in bn_candidates:
        if stacked_bytes(c) <= vmem_budget_bytes:
            bn, use_stacked = c, True
            break
    if not use_stacked:
        for c in bn_candidates:
            if prereduced_bytes(c) <= vmem_budget_bytes:
                bn = c
                break

    grid = (pl.cdiv(O, bn), pl.cdiv(B, bm))     # O outer, B innermost

    if use_stacked:
        needed = stacked_bytes(bn)
        kernel = functools.partial(_stacked_kernel, inv_k=inv_k,
                                   compute_dtype=compute_dtype)
        return pl.pallas_call(
            kernel,
            out_shape=jax.ShapeDtypeStruct((B, O), x.dtype),
            grid_spec=pltpu.PrefetchScalarGridSpec(
                num_scalar_prefetch=0,
                grid=grid,
                in_specs=[
                    # x tile: batch rows i, full feature dim.
                    pl.BlockSpec((bm, D), lambda j, i: (i, 0)),
                    # Full ensemble of weights for output columns j; block
                    # index constant across the inner axis -> copied once per
                    # O tile, held resident across all B tiles.
                    pl.BlockSpec((K, D, bn), lambda j, i: (0, 0, j)),
                    # Pre-summed bias row for output columns j.
                    pl.BlockSpec((1, bn), lambda j, i: (0, j)),
                ],
                out_specs=pl.BlockSpec((bm, bn), lambda j, i: (i, j)),
                scratch_shapes=[pltpu.VMEM((D, bn), jnp.float32)],
            ),
            compiler_params=pltpu.CompilerParams(
                # O axis independent ("parallel": megacore shards the weight
                # tensor); B axis reuses the cached fold ("arbitrary").
                dimension_semantics=("parallel", "arbitrary"),
                vmem_limit_bytes=int(min(max(needed + (2 << 20), 16 << 20),
                                         32 << 20)),
            ),
        )(x, weights, b_sum)

    # Fallback for very large K*D: pre-reduce the weights over K in the
    # wrapper (one pass over HBM) and run a plain matmul kernel.
    # TODO(synk): for shapes where even a [D, bn] tile blows VMEM, add an
    # inner "arbitrary" reduction axis over D with a pl.when-init accumulator.
    w_sum = jnp.sum(weights.astype(jnp.float32), axis=0)        # [D, O]
    needed = prereduced_bytes(bn)
    kernel = functools.partial(_prereduced_kernel, inv_k=inv_k,
                               compute_dtype=compute_dtype)
    return pl.pallas_call(
        kernel,
        out_shape=jax.ShapeDtypeStruct((B, O), x.dtype),
        grid_spec=pltpu.PrefetchScalarGridSpec(
            num_scalar_prefetch=0,
            grid=grid,
            in_specs=[
                pl.BlockSpec((bm, D), lambda j, i: (i, 0)),
                pl.BlockSpec((D, bn), lambda j, i: (0, j)),
                pl.BlockSpec((1, bn), lambda j, i: (0, j)),
            ],
            out_specs=pl.BlockSpec((bm, bn), lambda j, i: (i, j)),
        ),
        compiler_params=pltpu.CompilerParams(
            dimension_semantics=("parallel", "parallel"),
            vmem_limit_bytes=int(min(max(needed + (2 << 20), 16 << 20),
                                     32 << 20)),
        ),
    )(x, w_sum, b_sum)


if __name__ == "__main__":
    # Ensemble of 4 linear regression heads: batch=8, features=32, outputs=128.
    B, D, O, K = 8, 32, 128, 4

    key = jax.random.PRNGKey(0)
    kx, kw, kb = jax.random.split(key, 3)

    x = jax.random.normal(kx, (B, D), dtype=jnp.float32)
    weights = jax.random.normal(kw, (K, D, O), dtype=jnp.float32) * 0.1
    biases = jax.random.normal(kb, (K, O), dtype=jnp.float32) * 0.1

    out = jax.block_until_ready(ensemble_regression(x, weights, biases))

    # Pure-JAX reference: mean over ensemble members of (x @ W_k + b_k).
    ref = jnp.mean(
        jnp.einsum("bd,kdo->kbo", x, weights) + biases[:, None, :], axis=0
    )

    assert out.shape == (B, O)
    assert jnp.allclose(out, ref, atol=1e-4, rtol=1e-4), "mismatch vs reference"
    print("KERNEL_OK")
</pallas_src>

<mosaic_0001>
module attributes {stable_mosaic.version = 11 : i64} {
  func.func @_stacked_kernel(%arg0: i32, %arg1: i32, %arg2: memref<8x32xf32, #tpu.memory_space<vmem>>, %arg3: memref<4x32x128xf32, #tpu.memory_space<vmem>>, %arg4: memref<1x128xf32, #tpu.memory_space<vmem>>, %arg5: memref<8x128xf32, #tpu.memory_space<vmem>>, %arg6: memref<32x128xf32, #tpu.memory_space<vmem>>) attributes {dimension_semantics = [#tpu.dimension_semantics<parallel>, #tpu.dimension_semantics<arbitrary>], iteration_bounds = array<i64: 1, 1>, scalar_prefetch = 0 : i64, scratch_operands = 1 : i64, tpu.core_type = #tpu.core_type<tc>, window_params = [{transform_indices = @transform_0, window_bounds = array<i64: 8, 32>}, {transform_indices = @transform_1, window_bounds = array<i64: 4, 32, 128>}, {transform_indices = @transform_2, window_bounds = array<i64: 1, 128>}, {transform_indices = @transform_3, window_bounds = array<i64: 8, 128>}]} {
    %c0_i32 = arith.constant 0 : i32
    %0 = arith.cmpi eq, %arg1, %c0_i32 : i32
    %1 = arith.extui %0 : i1 to i32
    %c0_i32_0 = arith.constant 0 : i32
    %2 = arith.cmpi ne, %1, %c0_i32_0 : i32
    scf.if %2 {
      %c0_9 = arith.constant 0 : index
      %c0_10 = arith.constant 0 : index
      %c0_11 = arith.constant 0 : index
      %12 = vector.load %arg3[%c0_9, %c0_10, %c0_11] : memref<4x32x128xf32, #tpu.memory_space<vmem>>, vector<1x32x128xf32>
      %13 = vector.shape_cast %12 : vector<1x32x128xf32> to vector<32x128xf32>
      %c0_12 = arith.constant 0 : index
      %c0_13 = arith.constant 0 : index
      %14 = vector.load %arg6[%c0_12, %c0_13] : memref<32x128xf32, #tpu.memory_space<vmem>>, vector<32x128xf32>
      tpu.vector_store %arg6[%c0_12, %c0_13], %13 {strides = array<i32>} : memref<32x128xf32, #tpu.memory_space<vmem>>, vector<32x128xf32>,
      %c1_i32 = arith.constant 1 : i32
      %c0_14 = arith.constant 0 : index
      %c0_15 = arith.constant 0 : index
      %15 = vector.load %arg6[%c0_14, %c0_15] : memref<32x128xf32, #tpu.memory_space<vmem>>, vector<32x128xf32>
      %16 = arith.index_cast %c1_i32 : i32 to index
      %c0_16 = arith.constant 0 : index
      %c0_17 = arith.constant 0 : index
      %17 = vector.load %arg3[%16, %c0_16, %c0_17] : memref<4x32x128xf32, #tpu.memory_space<vmem>>, vector<1x32x128xf32>
      %18 = vector.shape_cast %17 : vector<1x32x128xf32> to vector<32x128xf32>
      %19 = arith.addf %15, %18 : vector<32x128xf32>
      %c0_18 = arith.constant 0 : index
      %c0_19 = arith.constant 0 : index
      %20 = vector.load %arg6[%c0_18, %c0_19] : memref<32x128xf32, #tpu.memory_space<vmem>>, vector<32x128xf32>
      tpu.vector_store %arg6[%c0_18, %c0_19], %19 {strides = array<i32>} : memref<32x128xf32, #tpu.memory_space<vmem>>, vector<32x128xf32>,
      %c2_i32 = arith.constant 2 : i32
      %c0_20 = arith.constant 0 : index
      %c0_21 = arith.constant 0 : index
      %21 = vector.load %arg6[%c0_20, %c0_21] : memref<32x128xf32, #tpu.memory_space<vmem>>, vector<32x128xf32>
      %22 = arith.index_cast %c2_i32 : i32 to index
      %c0_22 = arith.constant 0 : index
      %c0_23 = arith.constant 0 : index
      %23 = vector.load %arg3[%22, %c0_22, %c0_23] : memref<4x32x128xf32, #tpu.memory_space<vmem>>, vector<1x32x128xf32>
      %24 = vector.shape_cast %23 : vector<1x32x128xf32> to vector<32x128xf32>
      %25 = arith.addf %21, %24 : vector<32x128xf32>
      %c0_24 = arith.constant 0 : index
      %c0_25 = arith.constant 0 : index
      %26 = vector.load %arg6[%c0_24, %c0_25] : memref<32x128xf32, #tpu.memory_space<vmem>>, vector<32x128xf32>
      tpu.vector_store %arg6[%c0_24, %c0_25], %25 {strides = array<i32>} : memref<32x128xf32, #tpu.memory_space<vmem>>, vector<32x128xf32>,
      %c3_i32 = arith.constant 3 : i32
      %c0_26 = arith.constant 0 : index
      %c0_27 = arith.constant 0 : index
      %27 = vector.load %arg6[%c0_26, %c0_27] : memref<32x128xf32, #tpu.memory_space<vmem>>, vector<32x128xf32>
      %28 = arith.index_cast %c3_i32 : i32 to index
      %c0_28 = arith.constant 0 : index
      %c0_29 = arith.constant 0 : index
      %29 = vector.load %arg3[%28, %c0_28, %c0_29] : memref<4x32x128xf32, #tpu.memory_space<vmem>>, vector<1x32x128xf32>
      %30 = vector.shape_cast %29 : vector<1x32x128xf32> to vector<32x128xf32>
      %31 = arith.addf %27, %30 : vector<32x128xf32>
      %c0_30 = arith.constant 0 : index
      %c0_31 = arith.constant 0 : index
      %32 = vector.load %arg6[%c0_30, %c0_31] : memref<32x128xf32, #tpu.memory_space<vmem>>, vector<32x128xf32>
      tpu.vector_store %arg6[%c0_30, %c0_31], %31 {strides = array<i32>} : memref<32x128xf32, #tpu.memory_space<vmem>>, vector<32x128xf32>,
      %c3_i32_32 = arith.constant 3 : i32
    } else {
    }
    %c0 = arith.constant 0 : index
    %c0_1 = arith.constant 0 : index
    %3 = vector.load %arg2[%c0, %c0_1] : memref<8x32xf32, #tpu.memory_space<vmem>>, vector<8x32xf32>
    %c0_2 = arith.constant 0 : index
    %c0_3 = arith.constant 0 : index
    %4 = vector.load %arg6[%c0_2, %c0_3] : memref<32x128xf32, #tpu.memory_space<vmem>>, vector<32x128xf32>
    %cst = arith.constant dense<0.000000e+00> : vector<8x128xf32>
    %5 = tpu.matmul %3, %4, %cst {dimension_numbers = #tpu.dot_dimension_numbers<[1], [0], [0], [1], [0, 0, 1, 1], [], []>} : vector<8x32xf32>, vector<32x128xf32>, vector<8x128xf32> -> vector<8x128xf32>
    %c0_4 = arith.constant 0 : index
    %c0_5 = arith.constant 0 : index
    %6 = vector.load %arg4[%c0_4, %c0_5] : memref<1x128xf32, #tpu.memory_space<vmem>>, vector<1x128xf32>
    %7 = vector.broadcast %6 : vector<1x128xf32> to vector<8x128xf32>
    %8 = arith.addf %5, %7 : vector<8x128xf32>
    %cst_6 = arith.constant 2.500000e-01 : f32
    %9 = vector.broadcast %cst_6 : f32 to vector<8x128xf32>
    %10 = arith.mulf %8, %9 : vector<8x128xf32>
    %c0_7 = arith.constant 0 : index
    %c0_8 = arith.constant 0 : index
    %11 = vector.load %arg5[%c0_7, %c0_8] : memref<8x128xf32, #tpu.memory_space<vmem>>, vector<8x128xf32>
    tpu.vector_store %arg5[%c0_7, %c0_8], %10 {strides = array<i32>} : memref<8x128xf32, #tpu.memory_space<vmem>>, vector<8x128xf32>,
    return
  }
  func.func @transform_0(%arg0: i32, %arg1: i32) -> (i32, i32) {
    %c0_i32 = arith.constant 0 : i32
    %c0_i32_0 = arith.constant 0 : i32
    return %arg1, %c0_i32 : i32, i32
  }
  func.func @transform_1(%arg0: i32, %arg1: i32) -> (i32, i32, i32) {
    %c0_i32 = arith.constant 0 : i32
    %c0_i32_0 = arith.constant 0 : i32
    %c0_i32_1 = arith.constant 0 : i32
    return %c0_i32, %c0_i32_0, %arg0 : i32, i32, i32
  }
  func.func @transform_2(%arg0: i32, %arg1: i32) -> (i32, i32) {
    %c0_i32 = arith.constant 0 : i32
    %c0_i32_0 = arith.constant 0 : i32
    return %c0_i32, %arg0 : i32, i32
  }
  func.func @transform_3(%arg0: i32, %arg1: i32) -> (i32, i32) {
    %c0_i32 = arith.constant 0 : i32
    return %arg1, %arg0 : i32, i32
  }
}

</mosaic_0001>

<bundles_post_ra>
// kernel: tpu_custom_call.1
= control target key start
LH: loop header
LB: loop body
LE: loop exit
PB: predicated region body
PF: predicated region fallthrough
CT: control target
= control target key end

     0   :  { %8 = vsyncpa [#allocation4], 0  ;;  %s283_s0 = inlined_call_operand.hbm [shape: f32[8,32], index: 0, kind: input, shape index: {}]   ;;  %s284_s1 = inlined_call_operand.hbm [shape: f32[4,32,128], index: 1, kind: input, shape index: {}]   ;;  %s285_s2 = inlined_call_operand.vmem [shape: f32[1,128], index: 2, kind: input, shape index: {}]   ;;  %s286_s3 = inlined_call_operand.hbm [shape: f32[8,128], index: 3, kind: output, shape index: {}]  }
   0x1   :  { %9 = vsyncpa [#allocation7], 0 }
   0x2   :  { %10 = vsyncpa [#allocation5], 0  ;;  %s16_s14 = sshll.u32 %s283_s0, 4  ;;  %s246_s15 = smov [#allocation3]   ;;  %s17_s14 = int_to_ptr.hbm [resolvable:$true] %s16_s14 }
   0x3   :  { %s18_s16 = sshll.u32 %s246_s15, 4  ;;  %s26_s19 = sshll.u32 %s284_s1, 4  ;;  %s19_s16 = int_to_ptr.vmem [resolvable:$true] %s18_s16  ;;  %s27_s19 = int_to_ptr.hbm [resolvable:$true] %s26_s19 }
   0x4   :  { %21 = dma.hbm_to_vmem [thread:$0]  %s17_s14, 128, %s19_s16, [#allocation4]  }
   0x5   :  { %s247_s20 = smov [#allocation6]   ;;  %s248_s22 = smov 128  }
   0x6   :  { %s28_s21 = sshll.u32 %s247_s20, 4  ;;  %s249_s23 = smov 8   ;;  %s29_s21 = int_to_ptr.vmem [resolvable:$true] %s28_s21 }
   0x7   :  { %34 = dma.hbm_to_vmem [thread:$0]  %s27_s19, 2048, %s29_s21, [#allocation7], %s248_s22, %s248_s22, %s249_s23  }
   0x8   :  { %240 = dma.done.wait [#allocation4], 128  }
   0x9   :  { %241 = vsyncadd [#allocation4], 4294967168 }
   0xa   :  { %242 = dma.done.wait [#allocation7], 2048  }
   0xb   :  { %243 = vsyncadd [#allocation7], 4294965248  ;;  %v52_v0 = vld [vmem:[#allocation6 + $0x18] sm:$0xff]  ;;  %v51_v4 = vld [vmem:[#allocation6 + $0x10] sm:$0xff]  ;;  %vm117_vm0 = vcmask 261120   ;;  %s250_s24 = smov [#allocation8]  }
   0xc   :  { %v65_v1 = vld [vmem:[#allocation6 + $0x38] sm:$0xff]  ;;  %v64_v5 = vld [vmem:[#allocation6 + $0x30] sm:$0xff]  ;;  %v50_v9 = vld [vmem:[#allocation6 + $0x8] sm:$0xff]  ;;  %s148_s25 = sshll.u32 %s250_s24, 4  ;;  %s150_s28 = sshll.u32 %s286_s3, 4  ;;  %s149_s25 = int_to_ptr.vmem [resolvable:$true] %s148_s25  ;;  %s151_s28 = int_to_ptr.hbm [resolvable:$true] %s150_s28 }
   0xd   :  { %v82_v2 = vld [vmem:[#allocation6 + $0x58] sm:$0xff]  ;;  %v69_v3 = vadd.f32 %v65_v1, %v52_v0  ;;  %v68_v7 = vadd.f32 %v64_v5, %v51_v4  ;;  %v81_v8 = vld [vmem:[#allocation6 + $0x50] sm:$0xff]  ;;  %v63_v12 = vld [vmem:[#allocation6 + $0x28] sm:$0xff] }
   0xe   :  { %v99_v6 = vld [vmem:[#allocation6 + $0x78] sm:$0xff]  ;;  %v98_v11 = vld [vmem:[#allocation6 + $0x70] sm:$0xff]  ;;  %v80_v13 = vld [vmem:[#allocation6 + $0x48] sm:$0xff]  ;;  %v67_v15 = vadd.f32 %v63_v12, %v50_v9 }
   0xf   :  { %v86_v10 = vadd.f32 %v82_v2, %v69_v3  ;;  %v85_v14 = vadd.f32 %v81_v8, %v68_v7  ;;  %v49_v16 = vld [vmem:[#allocation6] sm:$0xff]  ;;  %v97_v20 = vld [vmem:[#allocation6 + $0x68] sm:$0xff]  ;;  %v108_v28 = vld [vmem:[#allocation3] sm:$0xff] }
  0x10   :  { %v62_v17 = vld [vmem:[#allocation6 + $0x20] sm:$0xff]  ;;  %v84_v23 = vadd.f32 %v80_v13, %v67_v15  ;;  %v167_v29 = vld [vmem:[%s285_s2] ss:$0 sm:$0xff] }
  0x11   :  { %v79_v18 = vld [vmem:[#allocation6 + $0x40] sm:$0xff]  ;;  %v103_v19 = vadd.f32 %v99_v6, %v86_v10  ;;  %v66_v21 = vadd.f32 %v62_v17, %v49_v16  ;;  %v102_v22 = vadd.f32 %v98_v11, %v85_v14 }
  0x12   :  { %v96_v24 = vld [vmem:[#allocation6 + $0x60] sm:$0xff]  ;;  %v101_v26 = vadd.f32 %v97_v20, %v84_v23 }
  0x13   :  { %133 = vmatpush.msra.mxu0 %v103_v19  ;;  %v83_v25 = vadd.f32 %v79_v18, %v66_v21 }
  0x15   :  { %134 = vmatpush.msra.mxu0 %v102_v22  ;;  %v100_v27 = vadd.f32 %v96_v24, %v83_v25 }
  0x17   :  { %135 = vmatpush.msra.mxu0 %v101_v26 }
  0x19   :  { %136 = vmatpush.msra.mxu0 %v100_v27 }
  0x1a   :  { %161 = vmatmul.msk.f32.vlgmr.msra.gmra.mxu0 %vm117_vm0, %v108_v28 }
  0x97   :  { %v138_v30 = vpop.f32.mrf.mxu0 }
  0x98   :  { %v139_v31 = vadd.f32 %v167_v29, %v138_v30 }
  0x9a   :  { %v141_v32 = vmul.f32 0.25, %v139_v31 }
  0x9c   :  { %142 = vst [vmem:[#allocation8] sm:$0xff] %v141_v32 }
  0x9d   :  { %153 = dma.vmem_to_hbm [thread:$0]  %s149_s25, 128, %s151_s28, [#allocation5]  }
  0x9e   :  { %244 = dma.done.wait [#allocation5], 128  }
  0x9f   :  { %245 = vsyncadd [#allocation5], 4294967168 }
  0xa0   :  { %158 = vsyncpa [#allocation4], 1 }
  0xa1   :  { %159 = vsyncpa [#allocation7], 1 }
  0xa2   :  { %160 = vsyncpa [#allocation5], 1 }

</bundles_post_ra>
